<compile_context>
chip_gen: v7x
topology: tpu7x:2x2x1
jax: 0.10.0
libtpu: 0.0.40
codegen_flags: <defaults>
</compile_context>

<pallas_src>
import functools

import jax
import jax.numpy as jnp
from jax.experimental import pallas as pl
from jax.experimental.pallas import tpu as pltpu


def _round_up(x, m):
    return (x + m - 1) // m * m


_DEFAULT_VMEM_CAPACITY = 64 * 1024 * 1024  # conservative fallback (v7x per-TC)


def _vmem_capacity_bytes():
    try:
        cap = getattr(pltpu.get_tpu_info(), "vmem_capacity_bytes", None)
        if cap:
            return int(cap)
    except Exception:
        pass
    return _DEFAULT_VMEM_CAPACITY


def _vmem_gather_kernel(ids_ref, table_ref, out_ref, *, tokens_per_block):
    """Row gather from a VMEM-resident table.

    ids_ref:   (n_pad,) int32, SMEM (scalar prefetch)
    table_ref: (V, D_pad)      VMEM-resident (constant block index)
    out_ref:   (g, D_pad)      lane-dense output block
    """
    base = pl.program_id(0) * tokens_per_block

    def body(k, carry):
        # TODO(synk): torch.nn.Embedding raises on out-of-range ids; this
        # gather is unchecked (invalid ids read whatever row the offset hits).
        out_ref[k, :] = table_ref[ids_ref[base + k], :]
        return carry

    jax.lax.fori_loop(0, tokens_per_block, body, 0)


def _hbm_gather_kernel(ids_ref, table_hbm, out_ref, rows_vmem, copy_sem, *,
                       tokens_per_block):
    """Row gather from an HBM-resident table via per-row async DMAs.

    ids_ref:   (n_pad,) int32, SMEM (scalar prefetch)
    table_hbm: (V, D_pad)      HBM (memory_space=pl.ANY)
    out_ref:   (g, D_pad)      lane-dense output block
    rows_vmem: (g, D_pad)      VMEM landing buffer for the row DMAs
    copy_sem:  DMA semaphore (all row copies accounted on one semaphore)
    """
    base = pl.program_id(0) * tokens_per_block

    def start(k, carry):
        pltpu.make_async_copy(
            table_hbm.at[ids_ref[base + k]], rows_vmem.at[k], copy_sem
        ).start()
        return carry

    jax.lax.fori_loop(0, tokens_per_block, start, 0)

    def wait(k, carry):
        # Only the destination shape / semaphore matter for the wait;
        # row 0 is a stand-in source of identical shape.
        pltpu.make_async_copy(table_hbm.at[0], rows_vmem.at[k], copy_sem).wait()
        return carry

    jax.lax.fori_loop(0, tokens_per_block, wait, 0)

    out_ref[...] = rows_vmem[...]


def word2vec_embedding_forward(embedding_matrix, x, padding_idx=0,
                               block_tokens=1024, force_hbm_gather=False):
    """
    embedding_matrix: (V, D) float array (the pretrained word2vec table)
    x:                (batch, seq) int word indices
    returns (out_emb, mask):
        out_emb: (seq, batch, D)  == Embedding(x).transpose(0, 1)
        mask:    (batch, seq)     == (x != padding_idx).float()
    """
    batch, seq = x.shape
    v, d = embedding_matrix.shape
    n = batch * seq
    dtype = embedding_matrix.dtype
    itemsize = jnp.dtype(dtype).itemsize

    # Lane-dense embedding dim: pad D to a multiple of 128 (sliced off below).
    d_pad = _round_up(d, 128)
    table = embedding_matrix
    if d_pad != d:
        table = jnp.pad(table, ((0, 0), (0, d_pad - d)))

    # Flatten ids in (seq, batch) order so gathered rows land directly in the
    # transposed (seq, batch, D) layout -- the transpose(0, 1) is free.
    flat_ids = jnp.transpose(x, (1, 0)).reshape(-1).astype(jnp.int32)

    # Tokens per grid step: big blocks (output-DMA bound), multiple of 8.
    g = max(8, _round_up(min(block_tokens, n), 8))
    n_pad = _round_up(n, g)
    flat_ids = jnp.pad(flat_ids, (0, n_pad - n), constant_values=padding_idx)
    num_blocks = n_pad // g

    table_bytes = v * d_pad * itemsize
    out_block_bytes = g * d_pad * itemsize
    # ~96 MiB usable on v5e/v6e (128 MiB physical), ~48 MiB per TC on v7x.
    vmem_budget = (_vmem_capacity_bytes() * 3) // 4
    # Assume the pipeline may double-buffer the resident table even though its
    # block index is constant, plus double-buffered output blocks + slack.
    resident_ok = (2 * table_bytes + 2 * out_block_bytes + (4 << 20)) <= vmem_budget

    out_shape = jax.ShapeDtypeStruct((n_pad, d_pad), dtype)

    if resident_ok and not force_hbm_gather:
        # Path A: table VMEM-resident for the whole grid, in-VMEM row gather.
        out_flat = pl.pallas_call(
            functools.partial(_vmem_gather_kernel, tokens_per_block=g),
            grid_spec=pltpu.PrefetchScalarGridSpec(
                num_scalar_prefetch=1,
                grid=(num_blocks,),
                in_specs=[pl.BlockSpec((v, d_pad), lambda i, ids: (0, 0))],
                out_specs=pl.BlockSpec((g, d_pad), lambda i, ids: (i, 0)),
            ),
            out_shape=out_shape,
            compiler_params=pltpu.CompilerParams(
                dimension_semantics=("parallel",),
                vmem_limit_bytes=int(vmem_budget),
            ),
            cost_estimate=pl.CostEstimate(
                flops=0,
                transcendentals=0,
                bytes_accessed=int(table_bytes + n_pad * d_pad * itemsize
                                   + n_pad * 4),
            ),
        )(flat_ids, table)
    else:
        # Path B: table stays in HBM; gather rows with per-row async DMAs.
        out_flat = pl.pallas_call(
            functools.partial(_hbm_gather_kernel, tokens_per_block=g),
            grid_spec=pltpu.PrefetchScalarGridSpec(
                num_scalar_prefetch=1,
                grid=(num_blocks,),
                in_specs=[pl.BlockSpec(memory_space=pl.ANY)],
                out_specs=pl.BlockSpec((g, d_pad), lambda i, ids: (i, 0)),
                scratch_shapes=[
                    pltpu.VMEM((g, d_pad), dtype),
                    pltpu.SemaphoreType.DMA(()),
                ],
            ),
            out_shape=out_shape,
            compiler_params=pltpu.CompilerParams(
                dimension_semantics=("arbitrary",),
                vmem_limit_bytes=int(vmem_budget),
            ),
            cost_estimate=pl.CostEstimate(
                flops=0,
                transcendentals=0,
                bytes_accessed=int(2 * n_pad * d_pad * itemsize + n_pad * 4),
            ),
        )(flat_ids, table)

    out_emb = out_flat[:n, :d].reshape(seq, batch, d)
    # Mask as a plain XLA op: fusing it into the kernel forced a (g,1)
    # masked-partial-store output; the re-read of x it saved is negligible.
    mask = (x != padding_idx).astype(jnp.float32)
    return out_emb, mask


if __name__ == "__main__":
    # Small deterministic setup.
    vocab_size = 64
    emb_dim = 32
    batch = 2
    seq = 8

    key = jax.random.PRNGKey(0)
    k_emb, k_ids = jax.random.split(key)

    # Deterministic "pretrained" embedding matrix (module's __init__ arg).
    embedding_matrix = jax.random.normal(
        k_emb, (vocab_size, emb_dim), dtype=jnp.float32
    )

    # Word index sequence; include some 0s so the padding mask is exercised.
    x = jax.random.randint(k_ids, (batch, seq), 0, vocab_size, dtype=jnp.int32)
    x = x.at[0, -2:].set(0)
    x = x.at[1, -1:].set(0)

    # Reference (plain JAX).
    ref_emb = jnp.transpose(embedding_matrix[x], (1, 0, 2))
    ref_mask = (x != 0).astype(jnp.float32)

    # Path A: VMEM-resident table gather (auto-selected for this small table).
    out_emb, mask = word2vec_embedding_forward(embedding_matrix, x)
    jax.block_until_ready((out_emb, mask))
    assert out_emb.shape == (seq, batch, emb_dim)
    assert mask.shape == (batch, seq)
    assert jnp.allclose(out_emb, ref_emb)
    assert jnp.allclose(mask, ref_mask)

    # Path B: HBM-resident table gather (the large-vocab production path),
    # forced here on the same small inputs to exercise both code paths.
    out_emb2, mask2 = word2vec_embedding_forward(
        embedding_matrix, x, force_hbm_gather=True
    )
    jax.block_until_ready((out_emb2, mask2))
    assert jnp.allclose(out_emb2, ref_emb)
    assert jnp.allclose(mask2, ref_mask)

    print("KERNEL_OK")
</pallas_src>

<mosaic_0001>
module attributes {stable_mosaic.version = 11 : i64} {
  func.func @_vmem_gather_kernel(%arg0: i32, %arg1: memref<16xi32, #tpu.memory_space<smem>>, %arg2: memref<64x128xf32, #tpu.memory_space<vmem>>, %arg3: memref<16x128xf32, #tpu.memory_space<vmem>>) attributes {dimension_semantics = [#tpu.dimension_semantics<parallel>], iteration_bounds = array<i64: 1>, scalar_prefetch = 1 : i64, scratch_operands = 0 : i64, tpu.core_type = #tpu.core_type<tc>, window_params = [{pipeline_mode = #tpu.pipeline_mode<synchronous>, transform_indices = @transform_0, window_bounds = array<i64: 64, 128>}, {transform_indices = @transform_1, window_bounds = array<i64: 16, 128>}]} {
    %c16_i32 = arith.constant 16 : i32
    %0 = arith.muli %arg0, %c16_i32 : i32
    %c0_i32 = arith.constant 0 : i32
    %c16_i32_0 = arith.constant 16 : i32
    %1 = arith.addi %c0_i32, %c16_i32_0 : i32
    %c1_i32 = arith.constant 1 : i32
    scf.for %arg4 = %c0_i32 to %1 step %c1_i32  : i32 {
      %2 = arith.addi %0, %arg4 : i32
      %3 = arith.index_cast %2 : i32 to index
      %4 = memref.load %arg1[%3] : memref<16xi32, #tpu.memory_space<smem>>
      %5 = arith.index_cast %4 : i32 to index
      %c0 = arith.constant 0 : index
      %6 = vector.load %arg2[%5, %c0] : memref<64x128xf32, #tpu.memory_space<vmem>>, vector<1x128xf32>
      %7 = vector.shape_cast %6 : vector<1x128xf32> to vector<128xf32>
      %8 = arith.index_cast %arg4 : i32 to index
      %c0_2 = arith.constant 0 : index
      %9 = vector.load %arg3[%8, %c0_2] : memref<16x128xf32, #tpu.memory_space<vmem>>, vector<1x128xf32>
      %10 = vector.shape_cast %9 : vector<1x128xf32> to vector<128xf32>
      %11 = vector.shape_cast %7 : vector<128xf32> to vector<1x128xf32>
      tpu.vector_store %arg3[%8, %c0_2], %11 {strides = array<i32>} : memref<16x128xf32, #tpu.memory_space<vmem>>, vector<1x128xf32>,
    }
    %c16_i32_1 = arith.constant 16 : i32
    return
  }
  func.func @transform_0(%arg0: i32, %arg1: memref<16xi32, #tpu.memory_space<smem>>) -> (i32, i32) {
    %c0_i32 = arith.constant 0 : i32
    %c0_i32_0 = arith.constant 0 : i32
    %c0_i32_1 = arith.constant 0 : i32
    return %c0_i32, %c0_i32_0 : i32, i32
  }
  func.func @transform_1(%arg0: i32, %arg1: memref<16xi32, #tpu.memory_space<smem>>) -> (i32, i32) {
    %c0_i32 = arith.constant 0 : i32
    %c0_i32_0 = arith.constant 0 : i32
    return %arg0, %c0_i32 : i32, i32
  }
}

</mosaic_0001>

<bundles_post_ra>
// kernel: tpu_custom_call.1
= control target key start
LH: loop header
LB: loop body
LE: loop exit
PB: predicated region body
PF: predicated region fallthrough
CT: control target
= control target key end

     0   :  { %s208_s0 = inlined_call_operand.hbm [shape: s32[16], index: 0, kind: input, shape index: {}]   ;;  %s209_s1 = inlined_call_operand.hbm [shape: f32[64,128], index: 1, kind: input, shape index: {}]   ;;  %s210_s2 = inlined_call_operand.hbm [shape: f32[16,128], index: 2, kind: output, shape index: {}]  }
   0x1   :  { %s78_s11 = scalar_lea.hbm %s208_s0, 16 }
   0x2   :  { %p79_p0 = scmp.ne.s32.totalorder %s208_s0, %s78_s11  ;;  %p82_p1 = scmp.lt.u32.totalorder %s78_s11, %s208_s0 }
   0x4   :  { %p84_p2 = pnand %p82_p1, %p79_p0 }
   0x6   :  { %87 = shalt.err (!%p84_p2)  }
   0x7   :  { %s146_s16 = smov [#allocation3]  }
   0x8   :  { %8 = dma.hbm_to_smem %s208_s0, 16, %s146_s16, [#allocation2] }
   0x9   :  { %136 = dma.done.wait [#allocation2], 16 }
   0xa   :  { %137 = vsyncadd [#allocation2], 4294967280 }
   0xb   :  { %10 = sfence }
   0xc   :  { %11 = vsyncpa [#allocation5], 0 }
   0xd   :  { %12 = vsyncpa [#allocation6], 0  ;;  %s147_s19 = smov [#allocation4]   ;;  %s88_s23 = scalar_lea.hbm %s209_s1, 1024 }
   0xe   :  { %s18_s20 = sshll.u32 %s147_s19, 4  ;;  %p89_p3 = scmp.ne.s32.totalorder %s209_s1, %s88_s23  ;;  %s19_s20 = int_to_ptr.vmem [resolvable:$true] %s18_s20 }
   0xf   :  { %p92_p4 = scmp.lt.u32.totalorder %s88_s23, %s209_s1 }
  0x11   :  { %p94_p5 = pnand %p92_p4, %p89_p3 }
  0x13   :  { %97 = shalt.err (!%p94_p5)
}
  0x14   :  { %s98_s0 = scalar_lea.vmem %s19_s20, 1024  ;;  %p103_p7 = scmp.lt.s32.totalorder %s19_s20, %s19_s20 }
  0x15   :  { %p99_p6 = scmp.ne.s32.totalorder %s19_s20, %s98_s0  ;;  %p104_p8 = scmp.lt.s32.totalorder %s98_s0, %s98_s0 }
  0x17   :  { %p105_p9 = por %p104_p8, %p103_p7 }
  0x19   :  { %p106_p10 = pnand %p105_p9, %p99_p6 }
  0x1b   :  { %109 = shalt.err (!%p106_p10)
}
  0x1c   :  { %s148_s28 = smov 128   ;;  %s149_s29 = smov 8  }
  0x1d   :  { %24 = dma.hbm_to_vmem [thread:$0]  %s209_s1, 1024, %s19_s20, [#allocation5], %s148_s28, %s148_s28, %s149_s29  }
  0x1e   :  { %138 = dma.done.wait [#allocation5], 1024  }
  0x1f   :  { %139 = vsyncadd [#allocation5], 4294966272  ;;  %s142_s4 = smov 0  }
  0x20 LB: > { %s36_s5 = sld [smem:[#allocation3 + %s144_s4]]  ;;  %s39_s7 = scalar_lea.vmem [#allocation7], %s144_s4  ;;  %s144_s4 = sphi %s142_s4, %s34_s4  }
  0x21   : > { %s34_s4 = sadd.s32 1, %s144_s4  }
  0x22   : > { %p31_p11 = scmp.ge.s32.totalorder %s34_s4, 16  }
  0x23   :  { %s150_s8 = smov (%p31_p11), [#allocation7]  }
  0x24   :  { %33 = sbr.rel (!%p31_p11) target bundleno = 32 (0x20), region = 37  ;;  %s46_s9 = sshll.u32 (%p31_p11), %s150_s8, 4  ;;  %s47_s9 = int_to_ptr.vmem [resolvable:$true] %s46_s9 }
  0x25   :  { %s110_s10 = scalar_lea.vmem (%p31_p11), %s47_s9, 256  ;;  %p115_p13 = scmp.lt.s32.totalorder (%p31_p11), %s47_s9, %s47_s9 }
  0x26   : > { %s37_s6 = scalar_lea.vmem [#allocation4], %s36_s5  ;;  %p111_p12 = scmp.ne.s32.totalorder (%p31_p11), %s47_s9, %s110_s10 }
  0x27   : > { %v38_v0 = vld [vmem:[%s37_s6] sm:$0x1]  ;;  %p116_p0 = scmp.lt.s32.totalorder (%p31_p11), %s110_s10, %s110_s10 }
  0x28   : > { %40 = vst [vmem:[%s39_s7] sm:$0x1] %v38_v0 }
  0x29   :  { %p117_p1 = por (%p31_p11), %p116_p0, %p115_p13 }
  0x2b   :  { %p118_p2 = pnand %p117_p1, %p111_p12 }
  0x2d   :  { %121 = shalt.err (!%p118_p2)
}
  0x2e   :  { %s122_s12 = scalar_lea.hbm %s210_s2, 256 }
  0x2f   :  { %p123_p3 = scmp.ne.s32.totalorder %s210_s2, %s122_s12  ;;  %p126_p4 = scmp.lt.u32.totalorder %s122_s12, %s210_s2 }
  0x31   :  { %p128_p5 = pnand %p126_p4, %p123_p3 }
  0x33   :  { %131 = shalt.err (!%p128_p5)
}
  0x34   :  { %52 = dma.vmem_to_hbm [thread:$0]  %s47_s9, 256, %s210_s2, [#allocation6], %s148_s28, %s148_s28, %s149_s29  }
  0x35   :  { %140 = dma.done.wait [#allocation6], 256  }
  0x36   :  { %141 = vsyncadd [#allocation6], 4294967040 }
  0x37   :  { %56 = vsyncpa [#allocation5], 1 }
  0x38   :  { %57 = vsyncpa [#allocation6], 1 }

</bundles_post_ra>
